<compile_context>
chip_gen: v6e
topology: v6e:2x2x1
jax: 0.10.0
libtpu: 0.0.40
codegen_flags: <defaults>
</compile_context>

<pallas_src>
import functools

import jax
import jax.numpy as jnp
from jax import lax
from jax.experimental import pallas as pl
from jax.experimental.pallas import tpu as pltpu


def _round_up(a: int, m: int) -> int:
    return (a + m - 1) // m * m


def _use_wide_mxu() -> bool:
    """True on 256x256-MXU generations (v6e / v7x); False on v2-v5 (128x128 MXU)."""
    try:
        kind = jax.devices()[0].device_kind.lower()
    except Exception:
        return True
    return not any(t in kind for t in ("v2", "v3", "v4", "v5"))


def _pos_emb_ln_kernel(x_ref, tags_ref, table_ref, gamma_ref, beta_ref, seg_ref,
                       o_ref, *, eps, feat_dim, wide_mxu):
    # x_ref:     (tm, W)   lane-dense packed rows, W = P * feat_dim
    # tags_ref:  (tm, W) int8 lane-expanded tags (wide_mxu) or (tm, P) int32
    # table_ref: (V, W)    embedding table rows, lane-tiled P times
    # gamma/beta:(1, W)    LayerNorm affine params, lane-tiled P times
    # seg_ref:   constant block-diagonal 0/1 matrix (W,W) or (2W,2W), hoisted to wrapper
    x = x_ref[...].astype(jnp.float32)
    tbl = table_ref[...].astype(jnp.float32)
    tm, W = x.shape
    V = tbl.shape[0]
    P = W // feat_dim

    # ---- position tag per lane ---------------------------------------------------
    if wide_mxu:
        # v6e/v7x: lane-expanded int8 tags from the wrapper; no in-kernel expansion.
        tag_lane = tags_ref[...].astype(jnp.int32)                    # (tm, W)
    else:
        # v5e & older: minimal HBM (16 B / packed row); expand in-kernel.
        tags = tags_ref[...]                                          # (tm, P) int32
        group = lax.broadcasted_iota(jnp.int32, (tm, W), 1) // feat_dim
        tag_lane = jnp.zeros((tm, W), jnp.int32)
        for g in range(P):
            tag_lane = jnp.where(group == g, tags[:, g:g + 1], tag_lane)

    # ---- embedding lookup: radix-2 select tree over the tiny vocab ----------------
    # 4 shared bit-tests + 8 selects for V=9 (vs 9 cmp + 9 select linear chain).
    level = [tbl[v:v + 1, :] for v in range(V)]
    bit = 0
    while len(level) > 1:
        take_hi = (tag_lane & (1 << bit)) != 0
        nxt = [jnp.where(take_hi, level[2 * i + 1], level[2 * i])
               for i in range(len(level) // 2)]
        if len(level) % 2:
            nxt.append(level[-1])
        level = nxt
        bit += 1
    pos = level[0]

    h = x + pos

    # ---- LayerNorm over each feat_dim-lane segment, staying lane-dense ------------
    # seg is exact 0/1; h @ seg yields per-segment sums already broadcast back across
    # the segment ("keepdims" for free).  f32 operands kept on purpose (see header).
    inv_d = 1.0 / float(feat_dim)
    if wide_mxu:
        # One fused K=2W pass on the 256x256 MXU: [h | h*h] @ blockdiag(seg, seg)
        # -> halves vmatmul pushes vs two separate K=W dots.
        hh = jnp.concatenate([h, h * h], axis=-1)                     # (tm, 2W)
        s = jnp.dot(hh, seg_ref[...], preferred_element_type=jnp.float32)
        mean = s[:, :W] * inv_d
        var = jnp.maximum(s[:, W:] * inv_d - mean * mean, 0.0)        # clamp cancellation
        y = (h - mean) * lax.rsqrt(var + eps)
    else:
        # 128x128-MXU chips: two K=W dots (already MXU-matched), centered variance.
        seg = seg_ref[...]
        mean = jnp.dot(h, seg, preferred_element_type=jnp.float32) * inv_d
        centered = h - mean
        var = jnp.dot(centered * centered, seg,
                      preferred_element_type=jnp.float32) * inv_d
        y = centered * lax.rsqrt(var + eps)

    y = y * gamma_ref[...].astype(jnp.float32) + beta_ref[...].astype(jnp.float32)

    # Dropout: inference (model.eval()) mode -> identity.
    o_ref[...] = y.astype(o_ref.dtype)


def position_embedding_forward(x, position_tags, table, gamma, beta, *, eps,
                               block_rows=512, wide_mxu=None):
    """x: (B, S, D) float, position_tags: (B, S) ints in [0, 2K]. Returns (B, S, D) in x.dtype."""
    B, S, D = x.shape
    V = table.shape[0]
    N = B * S
    if wide_mxu is None:
        wide_mxu = _use_wide_mxu()

    # Lane-dense packing: P consecutive logical rows share one 128-lane row.
    P = 128 // D if (D <= 128 and 128 % D == 0) else 1
    W = P * D

    x_flat = x.reshape(N, D)
    tags_flat = position_tags.reshape(N).astype(jnp.int32)

    # Pad ONLY up to a multiple of P (<= P-1 rows).  No pad-to-tile-boundary copy:
    # the grid handles a ragged last block (reads clamp, writes masked).
    Np = _round_up(N, P)
    if Np != N:
        x_flat = jnp.pad(x_flat, ((0, Np - N), (0, 0)))
        tags_flat = jnp.pad(tags_flat, ((0, Np - N),))     # pad with valid id 0
    M = Np // P

    # Row tile (packed rows): big enough to amortize the ~0.35 us/grid-step overhead,
    # capped so grid >= 4 when there is enough work (>= 2 steps per TensorCore on
    # v7x megacore).  Multiple of 32 sublanes (friendly to the int8 tag tiling).
    # VMEM at tm=512: ~1.7 MiB of pipelined buffers + a few MiB of f32 temporaries,
    # comfortably inside v5e's 16 MiB scoped limit -> no vmem_limit override needed.
    if M <= 32:
        tm = M                         # single full-array block (always a legal shape)
    else:
        tm = max(32, min(block_rows, _round_up(pl.cdiv(M, 4), 32)))
    grid = pl.cdiv(M, tm)

    x_packed = x_flat.reshape(M, W)                             # free metadata reshape
    table_packed = jnp.tile(table.reshape(V, D), (1, P))        # (V, W)
    gamma_packed = jnp.tile(gamma.reshape(1, D), (1, P))        # (1, W)
    beta_packed = jnp.tile(beta.reshape(1, D), (1, P))          # (1, W)

    if wide_mxu:
        # Lane-expanded int8 tags (128 B / packed row; 4x less VMEM than a lane-padded
        # (tm, P) int32 block) -> drops the in-kernel expansion chain on v6e/v7x.
        tags_in = jnp.broadcast_to(tags_flat[:, None], (Np, D)).astype(jnp.int8)
        tags_in = tags_in.reshape(M, W)
        tags_spec = pl.BlockSpec((tm, W), lambda i: (i, 0))
        seg_n = 2 * W
    else:
        tags_in = tags_flat.reshape(M, P)                       # 16 B / packed row
        tags_spec = pl.BlockSpec((tm, P), lambda i: (i, 0))
        seg_n = W

    # Constant block-diagonal 0/1 reduction matrix, hoisted out of the kernel
    # (built once in the wrapper, DMA'd once as a constant-index block).
    lane = jnp.arange(seg_n)
    seg_const = ((lane[:, None] // D) == (lane[None, :] // D)).astype(jnp.float32)

    kernel = functools.partial(_pos_emb_ln_kernel, eps=float(eps), feat_dim=D,
                               wide_mxu=wide_mxu)

    out_packed = pl.pallas_call(
        kernel,
        out_shape=jax.ShapeDtypeStruct((M, W), x.dtype),
        grid_spec=pltpu.PrefetchScalarGridSpec(
            num_scalar_prefetch=0,
            grid=(grid,),
            in_specs=[
                pl.BlockSpec((tm, W), lambda i: (i, 0)),        # packed x rows
                tags_spec,                                       # position tags
                pl.BlockSpec((V, W), lambda i: (0, 0)),          # embedding table (const)
                pl.BlockSpec((1, W), lambda i: (0, 0)),          # gamma (const)
                pl.BlockSpec((1, W), lambda i: (0, 0)),          # beta (const)
                pl.BlockSpec((seg_n, seg_n), lambda i: (0, 0)),  # seg matrix (const)
            ],
            out_specs=pl.BlockSpec((tm, W), lambda i: (i, 0)),
        ),
        compiler_params=pltpu.CompilerParams(dimension_semantics=("parallel",)),
    )(x_packed, tags_in, table_packed, gamma_packed, beta_packed, seg_const)

    out = out_packed.reshape(Np, D)
    if Np != N:
        out = out[:N]
    return out.reshape(B, S, D)


def _reference(x, position_tags, table, gamma, beta, eps):
    pos = table[position_tags]                         # (B, S, D)
    h = x + pos
    mean = jnp.mean(h, axis=-1, keepdims=True)
    var = jnp.mean((h - mean) ** 2, axis=-1, keepdims=True)
    return (h - mean) / jnp.sqrt(var + eps) * gamma + beta


if __name__ == "__main__":
    # configs: K=4 -> vocab 2K+1=9, feat_dim=32, epsilon=1e-12, dropout (eval -> identity)
    K = 4
    feat_dim = 32
    eps = 1e-12
    V = 2 * K + 1

    key = jax.random.PRNGKey(0)
    k_tab, k1, k2, k3, k4, k5, k6 = jax.random.split(key, 7)

    # nn.Embedding default init: N(0, 1); nn.LayerNorm default init: weight=1, bias=0
    table = jax.random.normal(k_tab, (V, feat_dim), dtype=jnp.float32)
    gamma = jnp.ones((feat_dim,), dtype=jnp.float32)
    beta = jnp.zeros((feat_dim,), dtype=jnp.float32)

    def check(B, S, kx, kt, dtype=jnp.float32, atol=1e-4, rtol=1e-4):
        x = jax.random.normal(kx, (B, S, feat_dim), dtype=jnp.float32).astype(dtype)
        tags = jax.random.randint(kt, (B, S), 0, V, dtype=jnp.int32)
        out = position_embedding_forward(x, tags, table, gamma, beta, eps=eps)
        out = jax.block_until_ready(out)
        ref = _reference(x.astype(jnp.float32), tags, table, gamma, beta, eps)
        assert out.shape == (B, S, feat_dim)
        assert jnp.allclose(out.astype(jnp.float32), ref, atol=atol, rtol=rtol), (
            f"mismatch vs reference (B={B}, S={S}, dtype={dtype})")

    # Small shape from the module spec: B=2, S=8, D=32 (single full-array block).
    check(2, 8, k1, k2)
    # Multi-step grid with a ragged last tile (M=250 packed rows, tm=64 -> grid=4).
    check(4, 250, k3, k4)
    # N not a multiple of the packing factor -> tiny pad-to-P fallback path.
    check(1, 13, k5, k6)
    # bf16 HBM boundary (halves x/out traffic); LN statistics still f32 in-kernel.
    check(2, 8, k1, k2, dtype=jnp.bfloat16, atol=3e-2, rtol=3e-2)

    print("KERNEL_OK")
</pallas_src>

<mosaic_0001>
module attributes {stable_mosaic.version = 11 : i64} {
  func.func @_pos_emb_ln_kernel(%arg0: i32, %arg1: memref<4x128xf32, #tpu.memory_space<vmem>>, %arg2: memref<4x128xi8, #tpu.memory_space<vmem>>, %arg3: memref<9x128xf32, #tpu.memory_space<vmem>>, %arg4: memref<1x128xf32, #tpu.memory_space<vmem>>, %arg5: memref<1x128xf32, #tpu.memory_space<vmem>>, %arg6: memref<256x256xf32, #tpu.memory_space<vmem>>, %arg7: memref<4x128xf32, #tpu.memory_space<vmem>>) attributes {dimension_semantics = [#tpu.dimension_semantics<parallel>], iteration_bounds = array<i64: 1>, scalar_prefetch = 0 : i64, scratch_operands = 0 : i64, tpu.core_type = #tpu.core_type<tc>, window_params = [{transform_indices = @transform_0, window_bounds = array<i64: 4, 128>}, {transform_indices = @transform_1, window_bounds = array<i64: 4, 128>}, {pipeline_mode = #tpu.pipeline_mode<synchronous>, transform_indices = @transform_2, window_bounds = array<i64: 9, 128>}, {pipeline_mode = #tpu.pipeline_mode<synchronous>, transform_indices = @transform_3, window_bounds = array<i64: 1, 128>}, {pipeline_mode = #tpu.pipeline_mode<synchronous>, transform_indices = @transform_4, window_bounds = array<i64: 1, 128>}, {pipeline_mode = #tpu.pipeline_mode<synchronous>, transform_indices = @transform_5, window_bounds = array<i64: 256, 256>}, {transform_indices = @transform_6, window_bounds = array<i64: 4, 128>}]} {
    %c0 = arith.constant 0 : index
    %c0_0 = arith.constant 0 : index
    %0 = vector.load %arg1[%c0, %c0_0] : memref<4x128xf32, #tpu.memory_space<vmem>>, vector<4x128xf32>
    %c0_1 = arith.constant 0 : index
    %c0_2 = arith.constant 0 : index
    %1 = vector.load %arg3[%c0_1, %c0_2] : memref<9x128xf32, #tpu.memory_space<vmem>>, vector<9x128xf32>
    %c0_3 = arith.constant 0 : index
    %c0_4 = arith.constant 0 : index
    %2 = vector.load %arg2[%c0_3, %c0_4] : memref<4x128xi8, #tpu.memory_space<vmem>>, vector<4x128xi8>
    %3 = arith.extsi %2 : vector<4x128xi8> to vector<4x128xi32>
    %4 = vector.extract_strided_slice %1 {offsets = [0, 0], sizes = [1, 128], strides = [1, 1]} : vector<9x128xf32> to vector<1x128xf32>
    %5 = vector.extract_strided_slice %1 {offsets = [1, 0], sizes = [1, 128], strides = [1, 1]} : vector<9x128xf32> to vector<1x128xf32>
    %6 = vector.extract_strided_slice %1 {offsets = [2, 0], sizes = [1, 128], strides = [1, 1]} : vector<9x128xf32> to vector<1x128xf32>
    %7 = vector.extract_strided_slice %1 {offsets = [3, 0], sizes = [1, 128], strides = [1, 1]} : vector<9x128xf32> to vector<1x128xf32>
    %8 = vector.extract_strided_slice %1 {offsets = [4, 0], sizes = [1, 128], strides = [1, 1]} : vector<9x128xf32> to vector<1x128xf32>
    %9 = vector.extract_strided_slice %1 {offsets = [5, 0], sizes = [1, 128], strides = [1, 1]} : vector<9x128xf32> to vector<1x128xf32>
    %10 = vector.extract_strided_slice %1 {offsets = [6, 0], sizes = [1, 128], strides = [1, 1]} : vector<9x128xf32> to vector<1x128xf32>
    %11 = vector.extract_strided_slice %1 {offsets = [7, 0], sizes = [1, 128], strides = [1, 1]} : vector<9x128xf32> to vector<1x128xf32>
    %12 = vector.extract_strided_slice %1 {offsets = [8, 0], sizes = [1, 128], strides = [1, 1]} : vector<9x128xf32> to vector<1x128xf32>
    %c1_i32 = arith.constant 1 : i32
    %13 = vector.broadcast %c1_i32 : i32 to vector<4x128xi32>
    %14 = arith.andi %3, %13 : vector<4x128xi32>
    %c0_i32 = arith.constant 0 : i32
    %15 = vector.broadcast %c0_i32 : i32 to vector<4x128xi32>
    %16 = arith.cmpi ne, %14, %15 : vector<4x128xi32>
    %17 = vector.shape_cast %5 : vector<1x128xf32> to vector<1x128xf32>
    %18 = vector.broadcast %17 : vector<1x128xf32> to vector<4x128xf32>
    %19 = vector.shape_cast %4 : vector<1x128xf32> to vector<1x128xf32>
    %20 = vector.broadcast %19 : vector<1x128xf32> to vector<4x128xf32>
    %21 = arith.select %16, %18, %20 : vector<4x128xi1>, vector<4x128xf32>
    %22 = vector.shape_cast %7 : vector<1x128xf32> to vector<1x128xf32>
    %23 = vector.broadcast %22 : vector<1x128xf32> to vector<4x128xf32>
    %24 = vector.shape_cast %6 : vector<1x128xf32> to vector<1x128xf32>
    %25 = vector.broadcast %24 : vector<1x128xf32> to vector<4x128xf32>
    %26 = arith.select %16, %23, %25 : vector<4x128xi1>, vector<4x128xf32>
    %27 = vector.shape_cast %9 : vector<1x128xf32> to vector<1x128xf32>
    %28 = vector.broadcast %27 : vector<1x128xf32> to vector<4x128xf32>
    %29 = vector.shape_cast %8 : vector<1x128xf32> to vector<1x128xf32>
    %30 = vector.broadcast %29 : vector<1x128xf32> to vector<4x128xf32>
    %31 = arith.select %16, %28, %30 : vector<4x128xi1>, vector<4x128xf32>
    %32 = vector.shape_cast %11 : vector<1x128xf32> to vector<1x128xf32>
    %33 = vector.broadcast %32 : vector<1x128xf32> to vector<4x128xf32>
    %34 = vector.shape_cast %10 : vector<1x128xf32> to vector<1x128xf32>
    %35 = vector.broadcast %34 : vector<1x128xf32> to vector<4x128xf32>
    %36 = arith.select %16, %33, %35 : vector<4x128xi1>, vector<4x128xf32>
    %c2_i32 = arith.constant 2 : i32
    %37 = vector.broadcast %c2_i32 : i32 to vector<4x128xi32>
    %38 = arith.andi %3, %37 : vector<4x128xi32>
    %c0_i32_5 = arith.constant 0 : i32
    %39 = vector.broadcast %c0_i32_5 : i32 to vector<4x128xi32>
    %40 = arith.cmpi ne, %38, %39 : vector<4x128xi32>
    %41 = arith.select %40, %26, %21 : vector<4x128xi1>, vector<4x128xf32>
    %42 = arith.select %40, %36, %31 : vector<4x128xi1>, vector<4x128xf32>
    %c4_i32 = arith.constant 4 : i32
    %43 = vector.broadcast %c4_i32 : i32 to vector<4x128xi32>
    %44 = arith.andi %3, %43 : vector<4x128xi32>
    %c0_i32_6 = arith.constant 0 : i32
    %45 = vector.broadcast %c0_i32_6 : i32 to vector<4x128xi32>
    %46 = arith.cmpi ne, %44, %45 : vector<4x128xi32>
    %47 = arith.select %46, %42, %41 : vector<4x128xi1>, vector<4x128xf32>
    %c8_i32 = arith.constant 8 : i32
    %48 = vector.broadcast %c8_i32 : i32 to vector<4x128xi32>
    %49 = arith.andi %3, %48 : vector<4x128xi32>
    %c0_i32_7 = arith.constant 0 : i32
    %50 = vector.broadcast %c0_i32_7 : i32 to vector<4x128xi32>
    %51 = arith.cmpi ne, %49, %50 : vector<4x128xi32>
    %52 = vector.shape_cast %12 : vector<1x128xf32> to vector<1x128xf32>
    %53 = vector.broadcast %52 : vector<1x128xf32> to vector<4x128xf32>
    %54 = arith.select %51, %53, %47 : vector<4x128xi1>, vector<4x128xf32>
    %55 = arith.addf %0, %54 : vector<4x128xf32>
    %56 = arith.mulf %55, %55 : vector<4x128xf32>
    %57 = tpu.concatenate %55, %56 in 1 : vector<4x128xf32>, vector<4x128xf32> -> vector<4x256xf32>
    %c0_8 = arith.constant 0 : index
    %c0_9 = arith.constant 0 : index
    %58 = vector.load %arg6[%c0_8, %c0_9] : memref<256x256xf32, #tpu.memory_space<vmem>>, vector<256x256xf32>
    %cst = arith.constant dense<0.000000e+00> : vector<4x256xf32>
    %59 = tpu.matmul %57, %58, %cst {dimension_numbers = #tpu.dot_dimension_numbers<[1], [0], [0], [1], [0, 0, 1, 1], [], []>} : vector<4x256xf32>, vector<256x256xf32>, vector<4x256xf32> -> vector<4x256xf32>
    %60 = vector.extract_strided_slice %59 {offsets = [0, 0], sizes = [4, 128], strides = [1, 1]} : vector<4x256xf32> to vector<4x128xf32>
    %cst_10 = arith.constant 3.125000e-02 : f32
    %61 = vector.broadcast %cst_10 : f32 to vector<4x128xf32>
    %62 = arith.mulf %60, %61 : vector<4x128xf32>
    %63 = vector.extract_strided_slice %59 {offsets = [0, 128], sizes = [4, 128], strides = [1, 1]} : vector<4x256xf32> to vector<4x128xf32>
    %cst_11 = arith.constant 3.125000e-02 : f32
    %64 = vector.broadcast %cst_11 : f32 to vector<4x128xf32>
    %65 = arith.mulf %63, %64 : vector<4x128xf32>
    %66 = arith.mulf %62, %62 : vector<4x128xf32>
    %67 = arith.subf %65, %66 : vector<4x128xf32>
    %cst_12 = arith.constant 0.000000e+00 : f32
    %68 = vector.broadcast %cst_12 : f32 to vector<4x128xf32>
    %69 = arith.maximumf %67, %68 : vector<4x128xf32>
    %70 = arith.subf %55, %62 : vector<4x128xf32>
    %cst_13 = arith.constant 9.99999996E-13 : f32
    %71 = vector.broadcast %cst_13 : f32 to vector<4x128xf32>
    %72 = arith.addf %69, %71 : vector<4x128xf32>
    %73 = math.rsqrt %72 : vector<4x128xf32>
    %74 = arith.mulf %70, %73 : vector<4x128xf32>
    %c0_14 = arith.constant 0 : index
    %c0_15 = arith.constant 0 : index
    %75 = vector.load %arg4[%c0_14, %c0_15] : memref<1x128xf32, #tpu.memory_space<vmem>>, vector<1x128xf32>
    %76 = vector.broadcast %75 : vector<1x128xf32> to vector<4x128xf32>
    %77 = arith.mulf %74, %76 : vector<4x128xf32>
    %c0_16 = arith.constant 0 : index
    %c0_17 = arith.constant 0 : index
    %78 = vector.load %arg5[%c0_16, %c0_17] : memref<1x128xf32, #tpu.memory_space<vmem>>, vector<1x128xf32>
    %79 = vector.broadcast %78 : vector<1x128xf32> to vector<4x128xf32>
    %80 = arith.addf %77, %79 : vector<4x128xf32>
    %c0_18 = arith.constant 0 : index
    %c0_19 = arith.constant 0 : index
    %81 = vector.load %arg7[%c0_18, %c0_19] : memref<4x128xf32, #tpu.memory_space<vmem>>, vector<4x128xf32>
    tpu.vector_store %arg7[%c0_18, %c0_19], %80 {strides = array<i32>} : memref<4x128xf32, #tpu.memory_space<vmem>>, vector<4x128xf32>,
    return
  }
  func.func @transform_0(%arg0: i32) -> (i32, i32) {
    %c0_i32 = arith.constant 0 : i32
    %c0_i32_0 = arith.constant 0 : i32
    return %arg0, %c0_i32 : i32, i32
  }
  func.func @transform_1(%arg0: i32) -> (i32, i32) {
    %c0_i32 = arith.constant 0 : i32
    %c0_i32_0 = arith.constant 0 : i32
    return %arg0, %c0_i32 : i32, i32
  }
  func.func @transform_2(%arg0: i32) -> (i32, i32) {
    %c0_i32 = arith.constant 0 : i32
    %c0_i32_0 = arith.constant 0 : i32
    %c0_i32_1 = arith.constant 0 : i32
    return %c0_i32, %c0_i32_0 : i32, i32
  }
  func.func @transform_3(%arg0: i32) -> (i32, i32) {
    %c0_i32 = arith.constant 0 : i32
    %c0_i32_0 = arith.constant 0 : i32
    %c0_i32_1 = arith.constant 0 : i32
    return %c0_i32, %c0_i32_0 : i32, i32
  }
  func.func @transform_4(%arg0: i32) -> (i32, i32) {
    %c0_i32 = arith.constant 0 : i32
    %c0_i32_0 = arith.constant 0 : i32
    %c0_i32_1 = arith.constant 0 : i32
    return %c0_i32, %c0_i32_0 : i32, i32
  }
  func.func @transform_5(%arg0: i32) -> (i32, i32) {
    %c0_i32 = arith.constant 0 : i32
    %c0_i32_0 = arith.constant 0 : i32
    %c0_i32_1 = arith.constant 0 : i32
    return %c0_i32, %c0_i32_0 : i32, i32
  }
  func.func @transform_6(%arg0: i32) -> (i32, i32) {
    %c0_i32 = arith.constant 0 : i32
    %c0_i32_0 = arith.constant 0 : i32
    return %arg0, %c0_i32 : i32, i32
  }
}

</mosaic_0001>

<bundles_post_ra>
// kernel: tpu_custom_call.1
= control target key start
LH: loop header
LB: loop body
LE: loop exit
PB: predicated region body
PF: predicated region fallthrough
CT: control target
= control target key end

     0   :  { %11 = vsyncpa [#allocation3], 0  ;;  %s492_s0 = inlined_call_operand.hbm [shape: f32[4,128], index: 0, kind: input, shape index: {}]   ;;  %s493_s1 = inlined_call_operand.vmem [shape: s8[4,128], index: 1, kind: input, shape index: {}]   ;;  %s494_s2 = inlined_call_operand.hbm [shape: f32[9,128], index: 2, kind: input, shape index: {}]   ;;  %s495_s3 = inlined_call_operand.vmem [shape: f32[1,128], index: 3, kind: input, shape index: {}]   ;;  %s496_s4 = inlined_call_operand.vmem [shape: f32[1,128], index: 4, kind: input, shape index: {}]   ;;  %s497_s5 = inlined_call_operand.hbm [shape: f32[256,256], index: 5, kind: input, shape index: {}]   ;;  %s498_s6 = inlined_call_operand.hbm [shape: f32[4,128], index: 6, kind: output, shape index: {}]  }
   0x1   :  { %12 = vsyncpa [#allocation6], 0 }
   0x2   :  { %13 = vsyncpa [#allocation4], 0  ;;  %s398_s21 = smov [#allocation5]  }
   0x3   :  { %s31_s22 = sshll.u32 %s398_s21, 4  ;;  %s32_s22 = int_to_ptr.vmem [resolvable:$true] %s31_s22 }
   0x4   :  { %s320_s23 = scalar_lea.vmem %s32_s22, 256  ;;  %p325_p1 = scmp.lt.s32.totalorder %s32_s22, %s32_s22 }
   0x5   :  { %p321_p0 = scmp.ne.s32.totalorder %s32_s22, %s320_s23  ;;  %p326_p2 = scmp.lt.s32.totalorder %s320_s23, %s320_s23 }
   0x7   :  { %p327_p3 = por %p326_p2, %p325_p1 }
   0x9   :  { %p328_p4 = pnand %p327_p3, %p321_p0 }
   0xb   :  { %331 = shalt.err (!%p328_p4)
}
   0xc   :  { %s399_s24 = smov 128   ;;  %s400_s25 = smov 8  }
   0xd   :  { %37 = dma.hbm_to_vmem [thread:$0]  %s494_s2, 256, %s32_s22, [#allocation6], %s399_s24, %s399_s24, %s400_s25  }
   0xe   :  { %s401_s28 = smov [#allocation2]   ;;  %s402_s30 = smov [#allocation7]  }
   0xf   :  { %s20_s29 = sshll.u32 %s401_s28, 4  ;;  %s47_s7 = sshll.u32 %s402_s30, 4  ;;  %s21_s29 = int_to_ptr.vmem [resolvable:$true] %s20_s29  ;;  %s48_s7 = int_to_ptr.vmem [resolvable:$true] %s47_s7 }
  0x10   :  { %s340_s8 = scalar_lea.vmem %s21_s29, 64  ;;  %p345_p6 = scmp.lt.s32.totalorder %s21_s29, %s21_s29 }
  0x11   :  { %p341_p5 = scmp.ne.s32.totalorder %s21_s29, %s340_s8  ;;  %p346_p7 = scmp.lt.s32.totalorder %s340_s8, %s340_s8 }
  0x13   :  { %p347_p8 = por %p346_p7, %p345_p6 }
  0x15   :  { %p348_p9 = pnand %p347_p8, %p341_p5 }
  0x17   :  { %351 = shalt.err (!%p348_p9)
}
  0x18   :  { %23 = dma.hbm_to_vmem [thread:$0]  %s492_s0, 64, %s21_s29, [#allocation3]  }
  0x19   :  { %s360_s11 = scalar_lea.vmem %s48_s7, 8192  ;;  %p365_p11 = scmp.lt.s32.totalorder %s48_s7, %s48_s7 }
  0x1a   :  { %p361_p10 = scmp.ne.s32.totalorder %s48_s7, %s360_s11  ;;  %p366_p12 = scmp.lt.s32.totalorder %s360_s11, %s360_s11 }
  0x1c   :  { %p367_p13 = por %p366_p12, %p365_p11 }
  0x1e   :  { %p368_p0 = pnand %p367_p13, %p361_p10 }
  0x20   :  { %371 = shalt.err (!%p368_p0)
}
  0x21   :  { %s403_s2 = smov 256   ;;  %s404_s12 = smov 16  }
  0x22   :  { %53 = dma.hbm_to_vmem [thread:$0]  %s497_s5, 8192, %s48_s7, [#allocation6], %s403_s2, %s403_s2, %s404_s12  }
  0x23   :  { %392 = dma.done.wait [#allocation3], 64  }
  0x24   :  { %393 = vsyncadd [#allocation3], 4294967232 }
  0x25   :  { %394 = dma.done.wait [#allocation6], 8448  }
  0x26   :  { %395 = vsyncadd [#allocation6], 4294958848  ;;  %v153_v0 = vld [vmem:[#allocation7 + $0xf8] sm:$0xff]  ;;  %v152_v1 = vld [vmem:[#allocation7 + $0xf0] sm:$0xff]  ;;  %v70_v13 = vlaneseq  ;;  %s405_s18 = smov [#allocation8]  }
  0x27   :  { %v151_v2 = vld [vmem:[#allocation7 + $0xe8] sm:$0xff]  ;;  %186 = vmatprep.subr.mxu0 %v153_v0  ;;  %v150_v3 = vld [vmem:[#allocation7 + $0xe0] sm:$0xff]  ;;  %v149_v4 = vld [vmem:[#allocation7 + $0xd8] sm:$0xff]  ;;  %s289_s19 = sshll.u32 %s405_s18, 4  ;;  %s290_s19 = int_to_ptr.vmem [resolvable:$true] %s289_s19 }
  0x28   :  { %187 = vmatpush1.msra.mxu0 %v152_v1  ;;  %v148_v5 = vld [vmem:[#allocation7 + $0xd0] sm:$0xff]  ;;  %v147_v6 = vld [vmem:[#allocation7 + $0xc8] sm:$0xff]  ;;  %v146_v7 = vld [vmem:[#allocation7 + $0xc0] sm:$0xff]  ;;  %v71_v18 = vshrl.u32 %v70_v13, 7  ;;  %s372_s20 = scalar_lea.vmem %s290_s19, 64  ;;  %p377_p2 = scmp.lt.s32.totalorder %s290_s19, %s290_s19 }
  0x29   :  { %188 = vmatprep.subr.mxu0 %v151_v2  ;;  %v145_v8 = vld [vmem:[#allocation7 + $0xb8] sm:$0xff]  ;;  %v144_v9 = vld [vmem:[#allocation7 + $0xb0] sm:$0xff]  ;;  %v143_v10 = vld [vmem:[#allocation7 + $0xa8] sm:$0xff]  ;;  %p373_p1 = scmp.ne.s32.totalorder %s290_s19, %s372_s20  ;;  %p378_p3 = scmp.lt.s32.totalorder %s372_s20, %s372_s20 }
  0x2a   :  { %189 = vmatpush1.msra.mxu0 %v150_v3  ;;  %v142_v11 = vld [vmem:[#allocation7 + $0xa0] sm:$0xff]  ;;  %v141_v12 = vld [vmem:[#allocation7 + $0x98] sm:$0xff]  ;;  %v140_v14 = vld [vmem:[#allocation7 + $0x90] sm:$0xff]  ;;  %v72_v23 = vsub.s32 1, %v71_v18  ;;  %v76_v25 = vsub.s32 0, %v71_v18  ;;  %v81_v26 = vsub.s32 3, %v71_v18 }
  0x2b   :  { %190 = vmatprep.subr.mxu0 %v149_v4  ;;  %v139_v15 = vld [vmem:[#allocation7 + $0x88] sm:$0xff]  ;;  %v138_v16 = vld [vmem:[#allocation7 + $0x80] sm:$0xff]  ;;  %v137_v17 = vld [vmem:[#allocation7 + $0x78] sm:$0xff]  ;;  %v85_v27 = vsub.s32 2, %v71_v18  ;;  %v90_v29 = vsub.s32 5, %v71_v18  ;;  %v94_v30 = vsub.s32 4, %v71_v18  ;;  %p379_p4 = por %p378_p3, %p377_p2 }
  0x2c   :  { %191 = vmatpush1.msra.mxu0 %v148_v5  ;;  %v136_v19 = vld [vmem:[#allocation7 + $0x70] sm:$0xff]  ;;  %v135_v20 = vld [vmem:[#allocation7 + $0x68] sm:$0xff]  ;;  %v134_v21 = vld [vmem:[#allocation7 + $0x60] sm:$0xff]  ;;  %v99_v31 = vsub.s32 7, %v71_v18  ;;  %v103_v32 = vsub.s32 6, %v71_v18 }
  0x2d   :  { %192 = vmatprep.subr.mxu0 %v147_v6  ;;  %v133_v22 = vld [vmem:[#allocation7 + $0x58] sm:$0xff]  ;;  %v132_v24 = vld [vmem:[#allocation7 + $0x50] sm:$0xff]  ;;  %v131_v28 = vld [vmem:[#allocation7 + $0x48] sm:$0xff]  ;;  %p380_p5 = pnand %p379_p4, %p373_p1 }
  0x2e   :  { %193 = vmatpush1.msra.mxu0 %v146_v7  ;;  %v130_v33 = vld [vmem:[#allocation7 + $0x40] sm:$0xff]  ;;  %v64_v34 = vld [vmem:[#allocation5] sm:$0xff]  ;;  %v129_v35 = vld [vmem:[#allocation7 + $0x38] sm:$0xff] }
  0x2f   :  { %194 = vmatprep.subr.mxu0 %v145_v8  ;;  %v66_v36 = vld [vmem:[%s493_s1] sm:$0x1]  ;;  %v73_v37 = vrot.slane %v64_v34, %v72_v23  ;;  %v128_v38 = vld [vmem:[#allocation7 + $0x30] sm:$0xff]  ;;  %v77_v40 = vrot.slane %v64_v34, %v76_v25  ;;  %v82_v41 = vrot.slane %v64_v34, %v81_v26  ;;  %v86_v42 = vrot.slane %v64_v34, %v85_v27  ;;  %v126_v48 = vld [vmem:[#allocation7 + $0x20] sm:$0xff] }
  0x30   :  { %195 = vmatpush1.msra.mxu0 %v144_v9  ;;  %v67_v39 = vunpack.c.0.s8 %v66_v36  ;;  %v127_v43 = vld [vmem:[#allocation7 + $0x28] sm:$0xff]  ;;  %v91_v44 = vrot.slane %v64_v34, %v90_v29  ;;  %v95_v45 = vrot.slane %v64_v34, %v94_v30  ;;  %v100_v46 = vrot.slane %v64_v34, %v99_v31  ;;  %v125_v53 = vld [vmem:[#allocation7 + $0x18] sm:$0xff]  ;;  %v124_v54 = vld [vmem:[#allocation7 + $0x10] sm:$0xff] }
  0x31   :  { %196 = vmatprep.subr.mxu0 %v143_v10  ;;  %v104_v47 = vrot.slane %v64_v34, %v103_v32  ;;  %v123_v58 = vld [vmem:[#allocation7 + $0x8] sm:$0xff]  ;;  %v299_v59 = vld [vmem:[#allocation5 + $0x8] ss:$0 sm:$0xff]  ;;  %v122_v0 = vld [vmem:[#allocation7] sm:$0xff] }
  0x32   :  { %197 = vmatpush1.msra.mxu0 %v142_v11  ;;  %v68_v49 = vand.u32 1, %v67_v39  ;;  %v106_v50 = vand.u32 2, %v67_v39  ;;  %v110_v51 = vand.u32 4, %v67_v39  ;;  %v113_v52 = vand.u32 8, %v67_v39  ;;  %v63_v1 = vld [vmem:[#allocation2] sm:$0xf] }
  0x33   :  { %198 = vmatprep.subr.mxu0 %v141_v12  ;;  %v185_v4 = vld [vmem:[#allocation7 + $0x1f8] sm:$0xff]  ;;  %v184_v6 = vld [vmem:[#allocation7 + $0x1f0] sm:$0xff]  ;;  %v183_v8 = vld [vmem:[#allocation7 + $0x1e8] sm:$0xff] }
  0x34   :  { %199 = vmatpush1.msra.mxu0 %v140_v14  ;;  %vm453_vm0 = vcmp.ne.s32.totalorder %v68_v49, 0  ;;  %vm107_vm1 = vcmp.ne.s32.totalorder %v106_v50, 0  ;;  %vm457_vm2 = vcmp.ne.s32.totalorder %v110_v51, 0  ;;  %vm461_vm3 = vcmp.ne.s32.totalorder %v113_v52, 0  ;;  %v182_v10 = vld [vmem:[#allocation7 + $0x1e0] sm:$0xff]  ;;  %v181_v11 = vld [vmem:[#allocation7 + $0x1d8] sm:$0xff] }
  0x35   :  { %200 = vmatprep.subr.mxu0 %v139_v15  ;;  %v78_v60 = vsel %vm453_vm0, %v73_v37, %v77_v40  ;;  %v87_v61 = vsel %vm453_vm0, %v82_v41, %v86_v42  ;;  %v96_v62 = vsel %vm453_vm0, %v91_v44, %v95_v45  ;;  %v105_v63 = vsel %vm453_vm0, %v100_v46, %v104_v47  ;;  %v180_v13 = vld [vmem:[#allocation7 + $0x1d0] sm:$0xff]  ;;  %v179_v14 = vld [vmem:[#allocation7 + $0x1c8] sm:$0xff]  ;;  %v178_v15 = vld [vmem:[#allocation7 + $0x1c0] sm:$0xff] }
  0x36   :  { %201 = vmatpush1.msra.mxu0 %v138_v16  ;;  %v108_v2 = vsel %vm107_vm1, %v87_v61, %v78_v60  ;;  %v109_v3 = vsel %vm107_vm1, %v105_v63, %v96_v62  ;;  %v177_v16 = vld [vmem:[#allocation7 + $0x1b8] sm:$0xff]  ;;  %v175_v18 = vld [vmem:[#allocation7 + $0x1a8] sm:$0xff]  ;;  %v170_v23 = vld [vmem:[#allocation7 + $0x180] sm:$0xff] }
  0x37   :  { %202 = vmatprep.subr.mxu0 %v137_v17  ;;  %v112_v5 = vsel %vm457_vm2, %v109_v3, %v108_v2  ;;  %v176_v17 = vld [vmem:[#allocation7 + $0x1b0] sm:$0xff]  ;;  %v167_v26 = vld [vmem:[#allocation7 + $0x168] sm:$0xff]  ;;  %v166_v27 = vld [vmem:[#allocation7 + $0x160] sm:$0xff] }
  0x38   :  { %203 = vmatpush1.msra.mxu0 %v136_v19  ;;  %v119_v7 = vsel %vm461_vm3, %v299_v59, %v112_v5  ;;  %v174_v19 = vld [vmem:[#allocation7 + $0x1a0] sm:$0xff]  ;;  %v168_v25 = vld [vmem:[#allocation7 + $0x170] sm:$0xff]  ;;  %v163_v30 = vld [vmem:[#allocation7 + $0x148] sm:$0xff] }
  0x39   :  { %204 = vmatprep.subr.mxu0 %v135_v20  ;;  %v477_v9 = vadd.f32 %v119_v7, %v63_v1  ;;  %v173_v20 = vld [vmem:[#allocation7 + $0x198] sm:$0xff]  ;;  %v164_v29 = vld [vmem:[#allocation7 + $0x150] sm:$0xff]  ;;  %v162_v31 = vld [vmem:[#allocation7 + $0x140] sm:$0xff] }
  0x3a   :  { %205 = vmatpush1.msra.mxu0 %v134_v21  ;;  %v172_v21 = vld [vmem:[#allocation7 + $0x190] sm:$0xff]  ;;  %v161_v32 = vld [vmem:[#allocation7 + $0x138] sm:$0xff]  ;;  %v159_v34 = vld [vmem:[#allocation7 + $0x128] sm:$0xff] }
  0x3b   :  { %206 = vmatprep.subr.mxu0 %v133_v22  ;;  %v121_v12 = vmul.f32 %v477_v9, %v477_v9  ;;  %v171_v22 = vld [vmem:[#allocation7 + $0x188] sm:$0xff]  ;;  %v157_v36 = vld [vmem:[#allocation7 + $0x118] sm:$0xff]  ;;  %v156_v37 = vld [vmem:[#allocation7 + $0x110] sm:$0xff] }
  0x3c   :  { %207 = vmatpush1.msra.mxu0 %v132_v24  ;;  %v169_v24 = vld [vmem:[#allocation7 + $0x178] sm:$0xff]  ;;  %v154_v39 = vld [vmem:[#allocation7 + $0x100] sm:$0xff]  ;;  %v300_v50 = vld [vmem:[%s495_s3] ss:$0 sm:$0xff] }
  0x3d   :  { %208 = vmatprep.subr.mxu0 %v131_v28  ;;  %250 = vmatprep.mubr.f32.mxu0 %v121_v12  ;;  %v165_v28 = vld [vmem:[#allocation7 + $0x158] sm:$0xff]  ;;  %v301_v52 = vld [vmem:[%s496_s4] ss:$0 sm:$0xff] }
  0x3e   :  { %209 = vmatpush1.msra.mxu0 %v130_v33  ;;  %v160_v33 = vld [vmem:[#allocation7 + $0x130] sm:$0xff] }
  0x3f   :  { %210 = vmatprep.subr.mxu0 %v129_v35  ;;  %v158_v35 = vld [vmem:[#allocation7 + $0x120] sm:$0xff] }
  0x40   :  { %211 = vmatpush1.msra.mxu0 %v128_v38  ;;  %v155_v38 = vld [vmem:[#allocation7 + $0x108] sm:$0xff] }
  0x41   :  { %212 = vmatprep.subr.mxu0 %v127_v43 }
  0x42   :  { %213 = vmatpush1.msra.mxu0 %v126_v48 }
  0x43   :  { %214 = vmatprep.subr.mxu0 %v125_v53 }
  0x44   :  { %215 = vmatpush1.msra.mxu0 %v124_v54 }
  0x45   :  { %216 = vmatprep.subr.mxu0 %v123_v58 }
  0x46   :  { %217 = vmatpush1.msra.mxu0 %v122_v0 }
  0x47   :  { %218 = vmatprep.subr.mxu0 %v185_v4 }
  0x48   :  { %219 = vmatpush2.msra.mxu0 %v184_v6 }
  0x49   :  { %220 = vmatprep.subr.mxu0 %v183_v8 }
  0x4a   :  { %221 = vmatpush2.msra.mxu0 %v182_v10 }
  0x4b   :  { %222 = vmatprep.subr.mxu0 %v181_v11 }
  0x4c   :  { %223 = vmatpush2.msra.mxu0 %v180_v13 }
  0x4d   :  { %224 = vmatprep.subr.mxu0 %v179_v14 }
  0x4e   :  { %225 = vmatpush2.msra.mxu0 %v178_v15 }
  0x4f   :  { %226 = vmatprep.subr.mxu0 %v177_v16 }
  0x50   :  { %227 = vmatpush2.msra.mxu0 %v176_v17 }
  0x51   :  { %228 = vmatprep.subr.mxu0 %v175_v18 }
  0x52   :  { %229 = vmatpush2.msra.mxu0 %v174_v19 }
  0x53   :  { %230 = vmatprep.subr.mxu0 %v173_v20 }
  0x54   :  { %231 = vmatpush2.msra.mxu0 %v172_v21 }
  0x55   :  { %232 = vmatprep.subr.mxu0 %v171_v22 }
  0x56   :  { %233 = vmatpush2.msra.mxu0 %v170_v23 }
  0x57   :  { %234 = vmatprep.subr.mxu0 %v169_v24 }
  0x58   :  { %235 = vmatpush2.msra.mxu0 %v168_v25 }
  0x59   :  { %236 = vmatprep.subr.mxu0 %v167_v26 }
  0x5a   :  { %237 = vmatpush2.msra.mxu0 %v166_v27 }
  0x5b   :  { %238 = vmatprep.subr.mxu0 %v165_v28 }
  0x5c   :  { %239 = vmatpush2.msra.mxu0 %v164_v29 }
  0x5d   :  { %240 = vmatprep.subr.mxu0 %v163_v30 }
  0x5e   :  { %241 = vmatpush2.msra.mxu0 %v162_v31 }
  0x5f   :  { %242 = vmatprep.subr.mxu0 %v161_v32 }
  0x60   :  { %243 = vmatpush2.msra.mxu0 %v160_v33 }
  0x61   :  { %244 = vmatprep.subr.mxu0 %v159_v34 }
  0x62   :  { %245 = vmatpush2.msra.mxu0 %v158_v35 }
  0x63   :  { %246 = vmatprep.subr.mxu0 %v157_v36 }
  0x64   :  { %247 = vmatpush2.msra.mxu0 %v156_v37 }
  0x65   :  { %248 = vmatprep.subr.mxu0 %v155_v38 }
  0x66   :  { %249 = vmatpush2.msra.mxu0 %v154_v39 }
  0x67   :  { %251 = vmatmul.mubr.f32.vlgmr.msra.gmra.mxu0 %v477_v9 }
 0x127   :  { %v252_v40 = vpop.f32.mrf.mxu0 }
 0x128   :  { %v257_v41 = vmul.f32 0.03125, %v252_v40 }
 0x129   :  { %v254_v42 = vpop.f32.mrf.mxu0 }
 0x12a   :  { %v259_v43 = vmul.f32 %v257_v41, %v257_v41  ;;  %v258_v44 = vmul.f32 0.03125, %v254_v42  ;;  %v262_v48 = vsub.f32 %v477_v9, %v257_v41 }
 0x12c   :  { %v260_v45 = vsub.f32 %v258_v44, %v259_v43 }
 0x12e   :  { %v261_v46 = vmax.f32 %v260_v45, 0.0 }
 0x130   :  { %v263_v47 = vadd.f32 1e-12, %v261_v46 }
 0x132   :  { %310 = vrsqrt.f32 %v263_v47 }
 0x13f   :  { %v311_v49 = vpop.eup %310 }
 0x140   :  { %v265_v51 = vmul.f32 %v311_v49, %v262_v48 }
 0x142   :  { %v273_v53 = vmul.f32 %v300_v50, %v265_v51 }
 0x144   :  { %v281_v54 = vadd.f32 %v301_v52, %v273_v53 }
 0x146   :  { %282 = vst [vmem:[#allocation8] sm:$0xf] %v281_v54 }
 0x147   :  { %383 = shalt.err (!%p380_p5)
}
 0x148   :  { %292 = dma.vmem_to_hbm [thread:$0]  %s290_s19, 64, %s498_s6, [#allocation4]  }
 0x149   :  { %396 = dma.done.wait [#allocation4], 64  }
 0x14a   :  { %397 = vsyncadd [#allocation4], 4294967232 }
 0x14b   :  { %296 = vsyncpa [#allocation3], 1 }
 0x14c   :  { %297 = vsyncpa [#allocation6], 1 }
 0x14d   :  { %298 = vsyncpa [#allocation4], 1 }

</bundles_post_ra>
